<compile_context>
chip_gen: v7x
topology: tpu7x:2x2x1
jax: 0.10.0
libtpu: 0.0.40
codegen_flags: <defaults>
</compile_context>

<pallas_src>
import functools

import jax
import jax.numpy as jnp
from jax.experimental import pallas as pl
from jax.experimental.pallas import tpu as pltpu


def _fuse_kernel(x_ref, w_ref, b_ref, o_ref, *, alpha, k, pad, t_in, t_out):
    """One grid step = one batch element x one spatial (H*W) tile.

    x_ref: (1, C_in,  T_in,  hw_tile)  fast-path input, full time axis
    w_ref: (k, C_out, C_in)            conv weights with BN scale folded in
    b_ref: (C_out, 1)                  folded BN bias
    o_ref: (1, C_out, T_out, hw_tile)  fused output
    """
    c_out = o_ref.shape[1]
    hw = o_ref.shape[3]
    bias = b_ref[...].astype(jnp.float32)                     # (C_out, 1)

    for t in range(t_out):                                     # static unroll
        acc = jnp.zeros((c_out, hw), jnp.float32)
        for kt in range(k):                                    # static unroll
            src = t * alpha + kt - pad
            if 0 <= src < t_in:        # temporal zero-padding: skip OOB taps
                frame = x_ref[0, :, src, :].astype(jnp.float32)   # (C_in, hw)
                acc = acc + jnp.dot(
                    w_ref[kt].astype(jnp.float32), frame,
                    preferred_element_type=jnp.float32)
        y = jnp.maximum(acc + bias, 0.0)                       # BN bias + ReLU
        o_ref[0, :, t, :] = y.astype(o_ref.dtype)


def _pick_hw_tile(hw, cap=2048):
    """Largest spatial tile <= cap that divides H*W (prefer multiples of 128)."""
    if hw <= cap:
        return hw
    for t in range(cap - cap % 128, 0, -128):   # lane-aligned divisors first
        if hw % t == 0:
            return t
    for t in range(cap, 0, -1):                 # fallback: any divisor
        if hw % t == 0:
            return t
    return hw
    # TODO(synk): masked tail path for H*W values with no reasonable divisor.


def fuse_fast_to_slow(x_s, x_f, w, gamma, beta, running_mean, running_var,
                      *, alpha, fusion_kernel, eps=1e-5, hw_tile=None):
    """Pallas implementation of FuseFastToSlow.forward([x_s, x_f])."""
    N, C_in, T_f, H, W = x_f.shape
    C_out = w.shape[0]
    k = fusion_kernel
    pad = k // 2
    T_out = (T_f + 2 * pad - k) // alpha + 1
    HW = H * W

    if hw_tile is None:
        hw_tile = _pick_hw_tile(HW)
    assert HW % hw_tile == 0

    # --- free reshape only (no transpose, no pad in HBM) ---
    xf = x_f.reshape(N, C_in, T_f, HW)

    # fold inference-mode BN scale into the conv weights; keep bias separate
    scale = gamma / jnp.sqrt(running_var + eps)                     # (C_out,)
    w_fold = (jnp.transpose(w[:, :, :, 0, 0], (2, 0, 1))            # (k, C_out, C_in)
              * scale[None, :, None]).astype(jnp.float32)
    bias = (beta - running_mean * scale).reshape(C_out, 1).astype(jnp.float32)
    # TODO(synk): training-mode BatchNorm (batch statistics + running-stat
    # updates) is not implemented; this is eval-mode BN.

    grid = (N, HW // hw_tile)

    kernel = functools.partial(_fuse_kernel, alpha=alpha, k=k, pad=pad,
                               t_in=T_f, t_out=T_out)

    fuse = pl.pallas_call(
        kernel,
        out_shape=jax.ShapeDtypeStruct((N, C_out, T_out, HW), x_f.dtype),
        grid_spec=pltpu.PrefetchScalarGridSpec(
            num_scalar_prefetch=0,
            grid=grid,
            in_specs=[
                pl.BlockSpec((1, C_in, T_f, hw_tile),
                             lambda n, m: (n, 0, 0, m)),
                pl.BlockSpec((k, C_out, C_in), lambda n, m: (0, 0, 0)),
                pl.BlockSpec((C_out, 1), lambda n, m: (0, 0)),
            ],
            out_specs=pl.BlockSpec((1, C_out, T_out, hw_tile),
                                   lambda n, m: (n, 0, 0, m)),
        ),
        compiler_params=pltpu.CompilerParams(
            dimension_semantics=("parallel", "parallel")),
    )(xf, w_fold, bias)

    # --- free reshape back to NCTHW, then channel concat with the slow path ---
    fuse_ncthw = fuse.reshape(N, C_out, T_out, H, W)
    x_s_fuse = jnp.concatenate([x_s, fuse_ncthw], axis=1)
    return [x_s_fuse, x_f]


def reference(x_s, x_f, w, gamma, beta, rm, rv, *, alpha, fusion_kernel, eps=1e-5):
    """Pure-JAX reference (conv_general_dilated), matches PyTorch eval-mode BN."""
    k = fusion_kernel
    dn = jax.lax.conv_dimension_numbers(x_f.shape, w.shape,
                                        ('NCDHW', 'OIDHW', 'NCDHW'))
    conv = jax.lax.conv_general_dilated(
        x_f, w, window_strides=(alpha, 1, 1),
        padding=((k // 2, k // 2), (0, 0), (0, 0)),
        dimension_numbers=dn)
    b = lambda v: v[None, :, None, None, None]
    bn = (conv - b(rm)) / jnp.sqrt(b(rv) + eps) * b(gamma) + b(beta)
    fuse = jnp.maximum(bn, 0.0)
    return [jnp.concatenate([x_s, fuse], axis=1), x_f]


if __name__ == "__main__":
    # module config
    dim_in = 4                       # fast-path channels
    fusion_conv_channel_ratio = 2
    fusion_kernel = 5
    alpha = 4
    C_out = dim_in * fusion_conv_channel_ratio

    # small input shapes (NCTHW)
    N, H, W = 2, 8, 8
    T_fast = 16
    T_slow = (T_fast + 2 * (fusion_kernel // 2) - fusion_kernel) // alpha + 1  # = 4
    C_slow = 16

    key = jax.random.PRNGKey(0)
    k1, k2, k3, k4, k5, k6, k7 = jax.random.split(key, 7)
    x_s = jax.random.normal(k1, (N, C_slow, T_slow, H, W), jnp.float32)
    x_f = jax.random.normal(k2, (N, dim_in, T_fast, H, W), jnp.float32)

    # deterministic parameters (Conv3d weight: [C_out, C_in, k, 1, 1], no bias)
    w = 0.1 * jax.random.normal(k3, (C_out, dim_in, fusion_kernel, 1, 1),
                                jnp.float32)
    gamma = 1.0 + 0.1 * jax.random.normal(k4, (C_out,), jnp.float32)
    beta = 0.1 * jax.random.normal(k5, (C_out,), jnp.float32)
    running_mean = 0.1 * jax.random.normal(k6, (C_out,), jnp.float32)
    running_var = jnp.abs(jax.random.normal(k7, (C_out,), jnp.float32)) + 0.5

    out = fuse_fast_to_slow(x_s, x_f, w, gamma, beta, running_mean,
                            running_var, alpha=alpha,
                            fusion_kernel=fusion_kernel)
    jax.block_until_ready(out)

    ref = reference(x_s, x_f, w, gamma, beta, running_mean, running_var,
                    alpha=alpha, fusion_kernel=fusion_kernel)

    assert out[0].shape == (N, C_slow + C_out, T_slow, H, W)
    assert out[1].shape == x_f.shape
    assert jnp.allclose(out[0], ref[0], atol=1e-4, rtol=1e-4)
    assert jnp.allclose(out[1], ref[1])

    print("KERNEL_OK")
</pallas_src>

<mosaic_0001>
module attributes {stable_mosaic.version = 11 : i64} {
  func.func @_fuse_kernel(%arg0: i32, %arg1: i32, %arg2: memref<1x4x16x64xf32, #tpu.memory_space<vmem>>, %arg3: memref<5x8x4xf32, #tpu.memory_space<vmem>>, %arg4: memref<8x1xf32, #tpu.memory_space<vmem>>, %arg5: memref<1x8x4x64xf32, #tpu.memory_space<vmem>>) attributes {dimension_semantics = [#tpu.dimension_semantics<parallel>, #tpu.dimension_semantics<parallel>], iteration_bounds = array<i64: 2, 1>, scalar_prefetch = 0 : i64, scratch_operands = 0 : i64, tpu.core_type = #tpu.core_type<tc>, window_params = [{transform_indices = @transform_0, window_bounds = array<i64: 1, 4, 16, 64>}, {pipeline_mode = #tpu.pipeline_mode<synchronous>, transform_indices = @transform_1, window_bounds = array<i64: 5, 8, 4>}, {pipeline_mode = #tpu.pipeline_mode<synchronous>, transform_indices = @transform_2, window_bounds = array<i64: 8, 1>}, {transform_indices = @transform_3, window_bounds = array<i64: 1, 8, 4, 64>}]} {
    %c0 = arith.constant 0 : index
    %c0_0 = arith.constant 0 : index
    %0 = vector.load %arg4[%c0, %c0_0] : memref<8x1xf32, #tpu.memory_space<vmem>>, vector<8x1xf32>
    %cst = arith.constant 0.000000e+00 : f32
    %1 = vector.broadcast %cst : f32 to vector<8x64xf32>
    %c0_1 = arith.constant 0 : index
    %c0_2 = arith.constant 0 : index
    %c0_3 = arith.constant 0 : index
    %c0_4 = arith.constant 0 : index
    %2 = vector.load %arg2[%c0_1, %c0_2, %c0_3, %c0_4] : memref<1x4x16x64xf32, #tpu.memory_space<vmem>>, vector<1x4x1x64xf32>
    %3 = vector.shape_cast %2 : vector<1x4x1x64xf32> to vector<4x64xf32>
    %c2 = arith.constant 2 : index
    %c0_5 = arith.constant 0 : index
    %c0_6 = arith.constant 0 : index
    %4 = vector.load %arg3[%c2, %c0_5, %c0_6] : memref<5x8x4xf32, #tpu.memory_space<vmem>>, vector<1x8x4xf32>
    %5 = vector.shape_cast %4 : vector<1x8x4xf32> to vector<8x4xf32>
    %cst_7 = arith.constant dense<0.000000e+00> : vector<8x64xf32>
    %6 = tpu.matmul %5, %3, %cst_7 {dimension_numbers = #tpu.dot_dimension_numbers<[1], [0], [0], [1], [0, 0, 1, 1], [], []>} : vector<8x4xf32>, vector<4x64xf32>, vector<8x64xf32> -> vector<8x64xf32>
    %7 = arith.addf %1, %6 : vector<8x64xf32>
    %c0_8 = arith.constant 0 : index
    %c0_9 = arith.constant 0 : index
    %c1 = arith.constant 1 : index
    %c0_10 = arith.constant 0 : index
    %8 = vector.load %arg2[%c0_8, %c0_9, %c1, %c0_10] : memref<1x4x16x64xf32, #tpu.memory_space<vmem>>, vector<1x4x1x64xf32>
    %9 = vector.shape_cast %8 : vector<1x4x1x64xf32> to vector<4x64xf32>
    %c3 = arith.constant 3 : index
    %c0_11 = arith.constant 0 : index
    %c0_12 = arith.constant 0 : index
    %10 = vector.load %arg3[%c3, %c0_11, %c0_12] : memref<5x8x4xf32, #tpu.memory_space<vmem>>, vector<1x8x4xf32>
    %11 = vector.shape_cast %10 : vector<1x8x4xf32> to vector<8x4xf32>
    %cst_13 = arith.constant dense<0.000000e+00> : vector<8x64xf32>
    %12 = tpu.matmul %11, %9, %cst_13 {dimension_numbers = #tpu.dot_dimension_numbers<[1], [0], [0], [1], [0, 0, 1, 1], [], []>} : vector<8x4xf32>, vector<4x64xf32>, vector<8x64xf32> -> vector<8x64xf32>
    %13 = arith.addf %7, %12 : vector<8x64xf32>
    %c0_14 = arith.constant 0 : index
    %c0_15 = arith.constant 0 : index
    %c2_16 = arith.constant 2 : index
    %c0_17 = arith.constant 0 : index
    %14 = vector.load %arg2[%c0_14, %c0_15, %c2_16, %c0_17] : memref<1x4x16x64xf32, #tpu.memory_space<vmem>>, vector<1x4x1x64xf32>
    %15 = vector.shape_cast %14 : vector<1x4x1x64xf32> to vector<4x64xf32>
    %c4 = arith.constant 4 : index
    %c0_18 = arith.constant 0 : index
    %c0_19 = arith.constant 0 : index
    %16 = vector.load %arg3[%c4, %c0_18, %c0_19] : memref<5x8x4xf32, #tpu.memory_space<vmem>>, vector<1x8x4xf32>
    %17 = vector.shape_cast %16 : vector<1x8x4xf32> to vector<8x4xf32>
    %cst_20 = arith.constant dense<0.000000e+00> : vector<8x64xf32>
    %18 = tpu.matmul %17, %15, %cst_20 {dimension_numbers = #tpu.dot_dimension_numbers<[1], [0], [0], [1], [0, 0, 1, 1], [], []>} : vector<8x4xf32>, vector<4x64xf32>, vector<8x64xf32> -> vector<8x64xf32>
    %19 = arith.addf %13, %18 : vector<8x64xf32>
    %20 = vector.broadcast %0 : vector<8x1xf32> to vector<8x64xf32>
    %21 = arith.addf %19, %20 : vector<8x64xf32>
    %cst_21 = arith.constant 0.000000e+00 : f32
    %22 = vector.broadcast %cst_21 : f32 to vector<8x64xf32>
    %23 = arith.maximumf %21, %22 : vector<8x64xf32>
    %c0_22 = arith.constant 0 : index
    %c0_23 = arith.constant 0 : index
    %c0_24 = arith.constant 0 : index
    %c0_25 = arith.constant 0 : index
    %24 = vector.load %arg5[%c0_22, %c0_23, %c0_24, %c0_25] : memref<1x8x4x64xf32, #tpu.memory_space<vmem>>, vector<1x8x1x64xf32>
    %25 = vector.shape_cast %24 : vector<1x8x1x64xf32> to vector<8x64xf32>
    %26 = vector.shape_cast %23 : vector<8x64xf32> to vector<1x8x1x64xf32>
    tpu.vector_store %arg5[%c0_22, %c0_23, %c0_24, %c0_25], %26 {strides = array<i32>} : memref<1x8x4x64xf32, #tpu.memory_space<vmem>>, vector<1x8x1x64xf32>,
    %cst_26 = arith.constant 0.000000e+00 : f32
    %27 = vector.broadcast %cst_26 : f32 to vector<8x64xf32>
    %c0_27 = arith.constant 0 : index
    %c0_28 = arith.constant 0 : index
    %c2_29 = arith.constant 2 : index
    %c0_30 = arith.constant 0 : index
    %28 = vector.load %arg2[%c0_27, %c0_28, %c2_29, %c0_30] : memref<1x4x16x64xf32, #tpu.memory_space<vmem>>, vector<1x4x1x64xf32>
    %29 = vector.shape_cast %28 : vector<1x4x1x64xf32> to vector<4x64xf32>
    %c0_31 = arith.constant 0 : index
    %c0_32 = arith.constant 0 : index
    %c0_33 = arith.constant 0 : index
    %30 = vector.load %arg3[%c0_31, %c0_32, %c0_33] : memref<5x8x4xf32, #tpu.memory_space<vmem>>, vector<1x8x4xf32>
    %31 = vector.shape_cast %30 : vector<1x8x4xf32> to vector<8x4xf32>
    %cst_34 = arith.constant dense<0.000000e+00> : vector<8x64xf32>
    %32 = tpu.matmul %31, %29, %cst_34 {dimension_numbers = #tpu.dot_dimension_numbers<[1], [0], [0], [1], [0, 0, 1, 1], [], []>} : vector<8x4xf32>, vector<4x64xf32>, vector<8x64xf32> -> vector<8x64xf32>
    %33 = arith.addf %27, %32 : vector<8x64xf32>
    %c0_35 = arith.constant 0 : index
    %c0_36 = arith.constant 0 : index
    %c3_37 = arith.constant 3 : index
    %c0_38 = arith.constant 0 : index
    %34 = vector.load %arg2[%c0_35, %c0_36, %c3_37, %c0_38] : memref<1x4x16x64xf32, #tpu.memory_space<vmem>>, vector<1x4x1x64xf32>
    %35 = vector.shape_cast %34 : vector<1x4x1x64xf32> to vector<4x64xf32>
    %c1_39 = arith.constant 1 : index
    %c0_40 = arith.constant 0 : index
    %c0_41 = arith.constant 0 : index
    %36 = vector.load %arg3[%c1_39, %c0_40, %c0_41] : memref<5x8x4xf32, #tpu.memory_space<vmem>>, vector<1x8x4xf32>
    %37 = vector.shape_cast %36 : vector<1x8x4xf32> to vector<8x4xf32>
    %cst_42 = arith.constant dense<0.000000e+00> : vector<8x64xf32>
    %38 = tpu.matmul %37, %35, %cst_42 {dimension_numbers = #tpu.dot_dimension_numbers<[1], [0], [0], [1], [0, 0, 1, 1], [], []>} : vector<8x4xf32>, vector<4x64xf32>, vector<8x64xf32> -> vector<8x64xf32>
    %39 = arith.addf %33, %38 : vector<8x64xf32>
    %c0_43 = arith.constant 0 : index
    %c0_44 = arith.constant 0 : index
    %c4_45 = arith.constant 4 : index
    %c0_46 = arith.constant 0 : index
    %40 = vector.load %arg2[%c0_43, %c0_44, %c4_45, %c0_46] : memref<1x4x16x64xf32, #tpu.memory_space<vmem>>, vector<1x4x1x64xf32>
    %41 = vector.shape_cast %40 : vector<1x4x1x64xf32> to vector<4x64xf32>
    %c2_47 = arith.constant 2 : index
    %c0_48 = arith.constant 0 : index
    %c0_49 = arith.constant 0 : index
    %42 = vector.load %arg3[%c2_47, %c0_48, %c0_49] : memref<5x8x4xf32, #tpu.memory_space<vmem>>, vector<1x8x4xf32>
    %43 = vector.shape_cast %42 : vector<1x8x4xf32> to vector<8x4xf32>
    %cst_50 = arith.constant dense<0.000000e+00> : vector<8x64xf32>
    %44 = tpu.matmul %43, %41, %cst_50 {dimension_numbers = #tpu.dot_dimension_numbers<[1], [0], [0], [1], [0, 0, 1, 1], [], []>} : vector<8x4xf32>, vector<4x64xf32>, vector<8x64xf32> -> vector<8x64xf32>
    %45 = arith.addf %39, %44 : vector<8x64xf32>
    %c0_51 = arith.constant 0 : index
    %c0_52 = arith.constant 0 : index
    %c5 = arith.constant 5 : index
    %c0_53 = arith.constant 0 : index
    %46 = vector.load %arg2[%c0_51, %c0_52, %c5, %c0_53] : memref<1x4x16x64xf32, #tpu.memory_space<vmem>>, vector<1x4x1x64xf32>
    %47 = vector.shape_cast %46 : vector<1x4x1x64xf32> to vector<4x64xf32>
    %c3_54 = arith.constant 3 : index
    %c0_55 = arith.constant 0 : index
    %c0_56 = arith.constant 0 : index
    %48 = vector.load %arg3[%c3_54, %c0_55, %c0_56] : memref<5x8x4xf32, #tpu.memory_space<vmem>>, vector<1x8x4xf32>
    %49 = vector.shape_cast %48 : vector<1x8x4xf32> to vector<8x4xf32>
    %cst_57 = arith.constant dense<0.000000e+00> : vector<8x64xf32>
    %50 = tpu.matmul %49, %47, %cst_57 {dimension_numbers = #tpu.dot_dimension_numbers<[1], [0], [0], [1], [0, 0, 1, 1], [], []>} : vector<8x4xf32>, vector<4x64xf32>, vector<8x64xf32> -> vector<8x64xf32>
    %51 = arith.addf %45, %50 : vector<8x64xf32>
    %c0_58 = arith.constant 0 : index
    %c0_59 = arith.constant 0 : index
    %c6 = arith.constant 6 : index
    %c0_60 = arith.constant 0 : index
    %52 = vector.load %arg2[%c0_58, %c0_59, %c6, %c0_60] : memref<1x4x16x64xf32, #tpu.memory_space<vmem>>, vector<1x4x1x64xf32>
    %53 = vector.shape_cast %52 : vector<1x4x1x64xf32> to vector<4x64xf32>
    %c4_61 = arith.constant 4 : index
    %c0_62 = arith.constant 0 : index
    %c0_63 = arith.constant 0 : index
    %54 = vector.load %arg3[%c4_61, %c0_62, %c0_63] : memref<5x8x4xf32, #tpu.memory_space<vmem>>, vector<1x8x4xf32>
    %55 = vector.shape_cast %54 : vector<1x8x4xf32> to vector<8x4xf32>
    %cst_64 = arith.constant dense<0.000000e+00> : vector<8x64xf32>
    %56 = tpu.matmul %55, %53, %cst_64 {dimension_numbers = #tpu.dot_dimension_numbers<[1], [0], [0], [1], [0, 0, 1, 1], [], []>} : vector<8x4xf32>, vector<4x64xf32>, vector<8x64xf32> -> vector<8x64xf32>
    %57 = arith.addf %51, %56 : vector<8x64xf32>
    %58 = vector.broadcast %0 : vector<8x1xf32> to vector<8x64xf32>
    %59 = arith.addf %57, %58 : vector<8x64xf32>
    %cst_65 = arith.constant 0.000000e+00 : f32
    %60 = vector.broadcast %cst_65 : f32 to vector<8x64xf32>
    %61 = arith.maximumf %59, %60 : vector<8x64xf32>
    %c0_66 = arith.constant 0 : index
    %c0_67 = arith.constant 0 : index
    %c1_68 = arith.constant 1 : index
    %c0_69 = arith.constant 0 : index
    %62 = vector.load %arg5[%c0_66, %c0_67, %c1_68, %c0_69] : memref<1x8x4x64xf32, #tpu.memory_space<vmem>>, vector<1x8x1x64xf32>
    %63 = vector.shape_cast %62 : vector<1x8x1x64xf32> to vector<8x64xf32>
    %64 = vector.shape_cast %61 : vector<8x64xf32> to vector<1x8x1x64xf32>
    tpu.vector_store %arg5[%c0_66, %c0_67, %c1_68, %c0_69], %64 {strides = array<i32>} : memref<1x8x4x64xf32, #tpu.memory_space<vmem>>, vector<1x8x1x64xf32>,
    %cst_70 = arith.constant 0.000000e+00 : f32
    %65 = vector.broadcast %cst_70 : f32 to vector<8x64xf32>
    %c0_71 = arith.constant 0 : index
    %c0_72 = arith.constant 0 : index
    %c6_73 = arith.constant 6 : index
    %c0_74 = arith.constant 0 : index
    %66 = vector.load %arg2[%c0_71, %c0_72, %c6_73, %c0_74] : memref<1x4x16x64xf32, #tpu.memory_space<vmem>>, vector<1x4x1x64xf32>
    %67 = vector.shape_cast %66 : vector<1x4x1x64xf32> to vector<4x64xf32>
    %c0_75 = arith.constant 0 : index
    %c0_76 = arith.constant 0 : index
    %c0_77 = arith.constant 0 : index
    %68 = vector.load %arg3[%c0_75, %c0_76, %c0_77] : memref<5x8x4xf32, #tpu.memory_space<vmem>>, vector<1x8x4xf32>
    %69 = vector.shape_cast %68 : vector<1x8x4xf32> to vector<8x4xf32>
    %cst_78 = arith.constant dense<0.000000e+00> : vector<8x64xf32>
    %70 = tpu.matmul %69, %67, %cst_78 {dimension_numbers = #tpu.dot_dimension_numbers<[1], [0], [0], [1], [0, 0, 1, 1], [], []>} : vector<8x4xf32>, vector<4x64xf32>, vector<8x64xf32> -> vector<8x64xf32>
    %71 = arith.addf %65, %70 : vector<8x64xf32>
    %c0_79 = arith.constant 0 : index
    %c0_80 = arith.constant 0 : index
    %c7 = arith.constant 7 : index
    %c0_81 = arith.constant 0 : index
    %72 = vector.load %arg2[%c0_79, %c0_80, %c7, %c0_81] : memref<1x4x16x64xf32, #tpu.memory_space<vmem>>, vector<1x4x1x64xf32>
    %73 = vector.shape_cast %72 : vector<1x4x1x64xf32> to vector<4x64xf32>
    %c1_82 = arith.constant 1 : index
    %c0_83 = arith.constant 0 : index
    %c0_84 = arith.constant 0 : index
    %74 = vector.load %arg3[%c1_82, %c0_83, %c0_84] : memref<5x8x4xf32, #tpu.memory_space<vmem>>, vector<1x8x4xf32>
    %75 = vector.shape_cast %74 : vector<1x8x4xf32> to vector<8x4xf32>
    %cst_85 = arith.constant dense<0.000000e+00> : vector<8x64xf32>
    %76 = tpu.matmul %75, %73, %cst_85 {dimension_numbers = #tpu.dot_dimension_numbers<[1], [0], [0], [1], [0, 0, 1, 1], [], []>} : vector<8x4xf32>, vector<4x64xf32>, vector<8x64xf32> -> vector<8x64xf32>
    %77 = arith.addf %71, %76 : vector<8x64xf32>
    %c0_86 = arith.constant 0 : index
    %c0_87 = arith.constant 0 : index
    %c8 = arith.constant 8 : index
    %c0_88 = arith.constant 0 : index
    %78 = vector.load %arg2[%c0_86, %c0_87, %c8, %c0_88] : memref<1x4x16x64xf32, #tpu.memory_space<vmem>>, vector<1x4x1x64xf32>
    %79 = vector.shape_cast %78 : vector<1x4x1x64xf32> to vector<4x64xf32>
    %c2_89 = arith.constant 2 : index
    %c0_90 = arith.constant 0 : index
    %c0_91 = arith.constant 0 : index
    %80 = vector.load %arg3[%c2_89, %c0_90, %c0_91] : memref<5x8x4xf32, #tpu.memory_space<vmem>>, vector<1x8x4xf32>
    %81 = vector.shape_cast %80 : vector<1x8x4xf32> to vector<8x4xf32>
    %cst_92 = arith.constant dense<0.000000e+00> : vector<8x64xf32>
    %82 = tpu.matmul %81, %79, %cst_92 {dimension_numbers = #tpu.dot_dimension_numbers<[1], [0], [0], [1], [0, 0, 1, 1], [], []>} : vector<8x4xf32>, vector<4x64xf32>, vector<8x64xf32> -> vector<8x64xf32>
    %83 = arith.addf %77, %82 : vector<8x64xf32>
    %c0_93 = arith.constant 0 : index
    %c0_94 = arith.constant 0 : index
    %c9 = arith.constant 9 : index
    %c0_95 = arith.constant 0 : index
    %84 = vector.load %arg2[%c0_93, %c0_94, %c9, %c0_95] : memref<1x4x16x64xf32, #tpu.memory_space<vmem>>, vector<1x4x1x64xf32>
    %85 = vector.shape_cast %84 : vector<1x4x1x64xf32> to vector<4x64xf32>
    %c3_96 = arith.constant 3 : index
    %c0_97 = arith.constant 0 : index
    %c0_98 = arith.constant 0 : index
    %86 = vector.load %arg3[%c3_96, %c0_97, %c0_98] : memref<5x8x4xf32, #tpu.memory_space<vmem>>, vector<1x8x4xf32>
    %87 = vector.shape_cast %86 : vector<1x8x4xf32> to vector<8x4xf32>
    %cst_99 = arith.constant dense<0.000000e+00> : vector<8x64xf32>
    %88 = tpu.matmul %87, %85, %cst_99 {dimension_numbers = #tpu.dot_dimension_numbers<[1], [0], [0], [1], [0, 0, 1, 1], [], []>} : vector<8x4xf32>, vector<4x64xf32>, vector<8x64xf32> -> vector<8x64xf32>
    %89 = arith.addf %83, %88 : vector<8x64xf32>
    %c0_100 = arith.constant 0 : index
    %c0_101 = arith.constant 0 : index
    %c10 = arith.constant 10 : index
    %c0_102 = arith.constant 0 : index
    %90 = vector.load %arg2[%c0_100, %c0_101, %c10, %c0_102] : memref<1x4x16x64xf32, #tpu.memory_space<vmem>>, vector<1x4x1x64xf32>
    %91 = vector.shape_cast %90 : vector<1x4x1x64xf32> to vector<4x64xf32>
    %c4_103 = arith.constant 4 : index
    %c0_104 = arith.constant 0 : index
    %c0_105 = arith.constant 0 : index
    %92 = vector.load %arg3[%c4_103, %c0_104, %c0_105] : memref<5x8x4xf32, #tpu.memory_space<vmem>>, vector<1x8x4xf32>
    %93 = vector.shape_cast %92 : vector<1x8x4xf32> to vector<8x4xf32>
    %cst_106 = arith.constant dense<0.000000e+00> : vector<8x64xf32>
    %94 = tpu.matmul %93, %91, %cst_106 {dimension_numbers = #tpu.dot_dimension_numbers<[1], [0], [0], [1], [0, 0, 1, 1], [], []>} : vector<8x4xf32>, vector<4x64xf32>, vector<8x64xf32> -> vector<8x64xf32>
    %95 = arith.addf %89, %94 : vector<8x64xf32>
    %96 = vector.broadcast %0 : vector<8x1xf32> to vector<8x64xf32>
    %97 = arith.addf %95, %96 : vector<8x64xf32>
    %cst_107 = arith.constant 0.000000e+00 : f32
    %98 = vector.broadcast %cst_107 : f32 to vector<8x64xf32>
    %99 = arith.maximumf %97, %98 : vector<8x64xf32>
    %c0_108 = arith.constant 0 : index
    %c0_109 = arith.constant 0 : index
    %c2_110 = arith.constant 2 : index
    %c0_111 = arith.constant 0 : index
    %100 = vector.load %arg5[%c0_108, %c0_109, %c2_110, %c0_111] : memref<1x8x4x64xf32, #tpu.memory_space<vmem>>, vector<1x8x1x64xf32>
    %101 = vector.shape_cast %100 : vector<1x8x1x64xf32> to vector<8x64xf32>
    %102 = vector.shape_cast %99 : vector<8x64xf32> to vector<1x8x1x64xf32>
    tpu.vector_store %arg5[%c0_108, %c0_109, %c2_110, %c0_111], %102 {strides = array<i32>} : memref<1x8x4x64xf32, #tpu.memory_space<vmem>>, vector<1x8x1x64xf32>,
    %cst_112 = arith.constant 0.000000e+00 : f32
    %103 = vector.broadcast %cst_112 : f32 to vector<8x64xf32>
    %c0_113 = arith.constant 0 : index
    %c0_114 = arith.constant 0 : index
    %c10_115 = arith.constant 10 : index
    %c0_116 = arith.constant 0 : index
    %104 = vector.load %arg2[%c0_113, %c0_114, %c10_115, %c0_116] : memref<1x4x16x64xf32, #tpu.memory_space<vmem>>, vector<1x4x1x64xf32>
    %105 = vector.shape_cast %104 : vector<1x4x1x64xf32> to vector<4x64xf32>
    %c0_117 = arith.constant 0 : index
    %c0_118 = arith.constant 0 : index
    %c0_119 = arith.constant 0 : index
    %106 = vector.load %arg3[%c0_117, %c0_118, %c0_119] : memref<5x8x4xf32, #tpu.memory_space<vmem>>, vector<1x8x4xf32>
    %107 = vector.shape_cast %106 : vector<1x8x4xf32> to vector<8x4xf32>
    %cst_120 = arith.constant dense<0.000000e+00> : vector<8x64xf32>
    %108 = tpu.matmul %107, %105, %cst_120 {dimension_numbers = #tpu.dot_dimension_numbers<[1], [0], [0], [1], [0, 0, 1, 1], [], []>} : vector<8x4xf32>, vector<4x64xf32>, vector<8x64xf32> -> vector<8x64xf32>
    %109 = arith.addf %103, %108 : vector<8x64xf32>
    %c0_121 = arith.constant 0 : index
    %c0_122 = arith.constant 0 : index
    %c11 = arith.constant 11 : index
    %c0_123 = arith.constant 0 : index
    %110 = vector.load %arg2[%c0_121, %c0_122, %c11, %c0_123] : memref<1x4x16x64xf32, #tpu.memory_space<vmem>>, vector<1x4x1x64xf32>
    %111 = vector.shape_cast %110 : vector<1x4x1x64xf32> to vector<4x64xf32>
    %c1_124 = arith.constant 1 : index
    %c0_125 = arith.constant 0 : index
    %c0_126 = arith.constant 0 : index
    %112 = vector.load %arg3[%c1_124, %c0_125, %c0_126] : memref<5x8x4xf32, #tpu.memory_space<vmem>>, vector<1x8x4xf32>
    %113 = vector.shape_cast %112 : vector<1x8x4xf32> to vector<8x4xf32>
    %cst_127 = arith.constant dense<0.000000e+00> : vector<8x64xf32>
    %114 = tpu.matmul %113, %111, %cst_127 {dimension_numbers = #tpu.dot_dimension_numbers<[1], [0], [0], [1], [0, 0, 1, 1], [], []>} : vector<8x4xf32>, vector<4x64xf32>, vector<8x64xf32> -> vector<8x64xf32>
    %115 = arith.addf %109, %114 : vector<8x64xf32>
    %c0_128 = arith.constant 0 : index
    %c0_129 = arith.constant 0 : index
    %c12 = arith.constant 12 : index
    %c0_130 = arith.constant 0 : index
    %116 = vector.load %arg2[%c0_128, %c0_129, %c12, %c0_130] : memref<1x4x16x64xf32, #tpu.memory_space<vmem>>, vector<1x4x1x64xf32>
    %117 = vector.shape_cast %116 : vector<1x4x1x64xf32> to vector<4x64xf32>
    %c2_131 = arith.constant 2 : index
    %c0_132 = arith.constant 0 : index
    %c0_133 = arith.constant 0 : index
    %118 = vector.load %arg3[%c2_131, %c0_132, %c0_133] : memref<5x8x4xf32, #tpu.memory_space<vmem>>, vector<1x8x4xf32>
    %119 = vector.shape_cast %118 : vector<1x8x4xf32> to vector<8x4xf32>
    %cst_134 = arith.constant dense<0.000000e+00> : vector<8x64xf32>
    %120 = tpu.matmul %119, %117, %cst_134 {dimension_numbers = #tpu.dot_dimension_numbers<[1], [0], [0], [1], [0, 0, 1, 1], [], []>} : vector<8x4xf32>, vector<4x64xf32>, vector<8x64xf32> -> vector<8x64xf32>
    %121 = arith.addf %115, %120 : vector<8x64xf32>
    %c0_135 = arith.constant 0 : index
    %c0_136 = arith.constant 0 : index
    %c13 = arith.constant 13 : index
    %c0_137 = arith.constant 0 : index
    %122 = vector.load %arg2[%c0_135, %c0_136, %c13, %c0_137] : memref<1x4x16x64xf32, #tpu.memory_space<vmem>>, vector<1x4x1x64xf32>
    %123 = vector.shape_cast %122 : vector<1x4x1x64xf32> to vector<4x64xf32>
    %c3_138 = arith.constant 3 : index
    %c0_139 = arith.constant 0 : index
    %c0_140 = arith.constant 0 : index
    %124 = vector.load %arg3[%c3_138, %c0_139, %c0_140] : memref<5x8x4xf32, #tpu.memory_space<vmem>>, vector<1x8x4xf32>
    %125 = vector.shape_cast %124 : vector<1x8x4xf32> to vector<8x4xf32>
    %cst_141 = arith.constant dense<0.000000e+00> : vector<8x64xf32>
    %126 = tpu.matmul %125, %123, %cst_141 {dimension_numbers = #tpu.dot_dimension_numbers<[1], [0], [0], [1], [0, 0, 1, 1], [], []>} : vector<8x4xf32>, vector<4x64xf32>, vector<8x64xf32> -> vector<8x64xf32>
    %127 = arith.addf %121, %126 : vector<8x64xf32>
    %c0_142 = arith.constant 0 : index
    %c0_143 = arith.constant 0 : index
    %c14 = arith.constant 14 : index
    %c0_144 = arith.constant 0 : index
    %128 = vector.load %arg2[%c0_142, %c0_143, %c14, %c0_144] : memref<1x4x16x64xf32, #tpu.memory_space<vmem>>, vector<1x4x1x64xf32>
    %129 = vector.shape_cast %128 : vector<1x4x1x64xf32> to vector<4x64xf32>
    %c4_145 = arith.constant 4 : index
    %c0_146 = arith.constant 0 : index
    %c0_147 = arith.constant 0 : index
    %130 = vector.load %arg3[%c4_145, %c0_146, %c0_147] : memref<5x8x4xf32, #tpu.memory_space<vmem>>, vector<1x8x4xf32>
    %131 = vector.shape_cast %130 : vector<1x8x4xf32> to vector<8x4xf32>
    %cst_148 = arith.constant dense<0.000000e+00> : vector<8x64xf32>
    %132 = tpu.matmul %131, %129, %cst_148 {dimension_numbers = #tpu.dot_dimension_numbers<[1], [0], [0], [1], [0, 0, 1, 1], [], []>} : vector<8x4xf32>, vector<4x64xf32>, vector<8x64xf32> -> vector<8x64xf32>
    %133 = arith.addf %127, %132 : vector<8x64xf32>
    %134 = vector.broadcast %0 : vector<8x1xf32> to vector<8x64xf32>
    %135 = arith.addf %133, %134 : vector<8x64xf32>
    %cst_149 = arith.constant 0.000000e+00 : f32
    %136 = vector.broadcast %cst_149 : f32 to vector<8x64xf32>
    %137 = arith.maximumf %135, %136 : vector<8x64xf32>
    %c0_150 = arith.constant 0 : index
    %c0_151 = arith.constant 0 : index
    %c3_152 = arith.constant 3 : index
    %c0_153 = arith.constant 0 : index
    %138 = vector.load %arg5[%c0_150, %c0_151, %c3_152, %c0_153] : memref<1x8x4x64xf32, #tpu.memory_space<vmem>>, vector<1x8x1x64xf32>
    %139 = vector.shape_cast %138 : vector<1x8x1x64xf32> to vector<8x64xf32>
    %140 = vector.shape_cast %137 : vector<8x64xf32> to vector<1x8x1x64xf32>
    tpu.vector_store %arg5[%c0_150, %c0_151, %c3_152, %c0_153], %140 {strides = array<i32>} : memref<1x8x4x64xf32, #tpu.memory_space<vmem>>, vector<1x8x1x64xf32>,
    return
  }
  func.func @transform_0(%arg0: i32, %arg1: i32) -> (i32, i32, i32, i32) {
    %c0_i32 = arith.constant 0 : i32
    %c0_i32_0 = arith.constant 0 : i32
    %c0_i32_1 = arith.constant 0 : i32
    return %arg0, %c0_i32, %c0_i32_0, %arg1 : i32, i32, i32, i32
  }
  func.func @transform_1(%arg0: i32, %arg1: i32) -> (i32, i32, i32) {
    %c0_i32 = arith.constant 0 : i32
    %c0_i32_0 = arith.constant 0 : i32
    %c0_i32_1 = arith.constant 0 : i32
    %c0_i32_2 = arith.constant 0 : i32
    return %c0_i32, %c0_i32_0, %c0_i32_1 : i32, i32, i32
  }
  func.func @transform_2(%arg0: i32, %arg1: i32) -> (i32, i32) {
    %c0_i32 = arith.constant 0 : i32
    %c0_i32_0 = arith.constant 0 : i32
    %c0_i32_1 = arith.constant 0 : i32
    return %c0_i32, %c0_i32_0 : i32, i32
  }
  func.func @transform_3(%arg0: i32, %arg1: i32) -> (i32, i32, i32, i32) {
    %c0_i32 = arith.constant 0 : i32
    %c0_i32_0 = arith.constant 0 : i32
    %c0_i32_1 = arith.constant 0 : i32
    return %arg0, %c0_i32, %c0_i32_0, %arg1 : i32, i32, i32, i32
  }
}

</mosaic_0001>

<bundles_post_ra>
// kernel: tpu_custom_call.1
= control target key start
LH: loop header
LB: loop body
LE: loop exit
PB: predicated region body
PF: predicated region fallthrough
CT: control target
= control target key end

     0   :  { %8 = vsyncpa [#allocation3], 0  ;;  %s3172_s0 = inlined_call_operand.hbm [shape: f32[2,4,16,64], index: 0, kind: input, shape index: {}]   ;;  %s3173_s1 = inlined_call_operand.vmem [shape: f32[5,8,4], index: 1, kind: input, shape index: {}]   ;;  %s3174_s2 = inlined_call_operand.vmem [shape: f32[8,1], index: 2, kind: input, shape index: {}]   ;;  %s3175_s3 = inlined_call_operand.hbm [shape: f32[2,8,4,64], index: 3, kind: output, shape index: {}]  }
   0x1   :  { %10 = vsyncpa [#allocation3 + $0x1], 0 }
   0x2   :  { %11 = vsyncpa [#allocation4], 0 }
   0x3   :  { %13 = vsyncpa [#allocation4 + $0x1], 0  ;;  %s2633_s12 = smov 0   ;;  %s2635_s13 = smov 0  }
   0x4   :  { %s2637_s14 = smov 0   ;;  %s2639_s15 = smov 0  }
   0x5   :  { %s2641_s16 = smov 0   ;;  %s2643_s17 = smov 0  }
   0x6 LB: > { %s2224_s18 = sadd.s32 4294967295, %s2601_s17   ;;  %s2225_s19 = sadd.s32 4294967294, %s2601_s17   ;;  %s2601_s17 = sphi %s2643_s17, %s19_s17   ;;  %s2597_s16 = sphi %s2641_s16, %s3190_s16   ;;  %s2593_s15 = sphi %s2639_s15, %s3189_s15   ;;  %s2589_s14 = sphi %s2637_s14, %s3188_s14   ;;  %s2585_s13 = sphi %s2635_s13, %s3187_s13   ;;  %s2581_s12 = sphi %s2633_s12, %s3186_s12  }
   0x7   : > { %s31_s20 = sadd.s32 1, %s2597_s16  ;;  %s40_s21 = sadd.s32 1, %s2589_s14 }
   0x8   : > { %p33_p0 = scmp.ge.s32.totalorder %s31_s20, 2  ;;  %p47_p1 = scmp.ne.s32.totalorder %s2589_s14, %s2585_s13 }
   0x9   : > { %p48_p2 = scmp.eq.s32.totalorder %s2601_s17, 0  ;;  %p53_p3 = scmp.ne.s32.totalorder %s2585_s13, %s2581_s12 }
   0xa   : > { %s3192_s20 = smov (%p33_p0, %s31_s20), 0  ;;  %p54_p5 = scmp.eq.s32.totalorder %s2224_s18, 0 }
   0xb   : > { %p2674_p4 = por %p48_p2, %p47_p1  ;;  %s35_s23 = ssub.s32 %s2597_s16, %s3192_s20 }
   0xc   : > { %p121_p6 = scmp.eq.s32.totalorder %s2224_s18, 1  ;;  %p38_p7 = scmp.eq.s32.totalorder %s35_s23, 0 }
   0xd   : > { %p2680_p8 = por %p54_p5, %p53_p3  ;;  %p127_p10 = scmp.eq.s32.totalorder %s2225_s19, 1 }
   0xe   : > { %p2684_p9 = por %p121_p6, %p47_p1  ;;  %p2430_p13 = scmp.lt.s32.totalorder %s2601_s17, 2 }
   0xf   : > { %s2689_s26 = scalar_select %p38_p7, %s2589_s14, %s40_s21  }
  0x10   : > { %s3179_s25 = scalar_select %p2684_p9, 1, 0 }
  0x11   : > { %p2691_p11 = por %p127_p10, %p53_p3  ;;  %s153_s28 = sand.u32 1, %s2589_s14  }
  0x12   : > { %s2228_s29 = sshll.u32 %s153_s28, 6  ;;  %s2290_s30 = sshll.u32 %s2597_s16, 10 }
  0x13   : > { %s3180_s27 = scalar_select %p2691_p11, 1, 0 }
  0x14   : > { %s2702_s6 = scalar_lea.hbm %s3172_s0, %s2290_s30  ;;  %s157_s7 = scalar_lea.vmem [#allocation2], %s2228_s29 }
  0x15   : > { %s165_s8 = sshll.u32 %s157_s7, 4  ;;  %p2708_p0 = pnand %p2430_p13, %p2674_p4  ;;  %s2704_s8 = int_to_ptr.vmem [resolvable:$true] %s165_s8 }
  0x16   : > { %s2713_s10 = scalar_lea.sflag [#allocation3], %s153_s28  ;;  %s2489_s11 = scalar_lea.hbm %s2702_s6, 1024 }
  0x17   : > { %p2490_p2 = scmp.ne.s32.totalorder %s2702_s6, %s2489_s11  ;;  %p2491_p3 = pneg %p2708_p0 }
  0x18   : > { %s2494_s21 = scalar_lea.hbm %s3172_s0, 2048  ;;  %p2495_p4 = scmp.lt.u32.totalorder %s2702_s6, %s3172_s0 }
  0x19   : > { %p2492_p5 = pnand %p2491_p3, %p2490_p2  ;;  %p2496_p7 = scmp.lt.u32.totalorder %s2494_s21, %s2489_s11 }
  0x1a   : > { %p2498_p13 = scmp.lt.u32.totalorder %s2489_s11, %s2702_s6 }
  0x1b   : > { %p2493_p6 = pneg %p2492_p5  ;;  %p2497_p10 = por %p2496_p7, %p2495_p4 }
  0x1d   : > { %p2499_p12 = por %p2498_p13, %p2497_p10 }
  0x1f   : > { %p2500_p1 = pnand %p2499_p12, %p2493_p6 }
  0x21   : > { %2503 = shalt.err (!%p2500_p1)
}
  0x22   : > { %s2504_s28 = scalar_lea.vmem %s2704_s8, 1024  ;;  %s2603_s29 = smov [#allocation2]  }
  0x23   : > { %p2505_p2 = scmp.ne.s32.totalorder %s2704_s8, %s2504_s28  ;;  %s2509_s30 = sshll.u32 %s2603_s29, 4  ;;  %s2510_s30 = int_to_ptr.vmem [resolvable:$false] %s2509_s30 }
  0x24   : > { %s2511_s4 = scalar_lea.vmem %s2510_s30, 2048  ;;  %p2512_p9 = scmp.lt.s32.totalorder %s2704_s8, %s2510_s30 }
  0x25   : > { %p2507_p5 = pnand %p2505_p2, %p2491_p3  ;;  %p2513_p4 = scmp.lt.s32.totalorder %s2511_s4, %s2504_s28 }
  0x27   : > { %p2508_p11 = pneg %p2507_p5  ;;  %p2514_p7 = por %p2513_p4, %p2512_p9 }
  0x29   : > { %p2515_p10 = pnand %p2514_p7, %p2508_p11 }
  0x2b   : > { %2518 = shalt.err (!%p2515_p10)
}
  0x2c   : > { %s2604_s5 = smov 128   ;;  %s2605_s7 = smov 8  }
  0x2d   : > { %2425 = dma.hbm_to_vmem [thread:$0]  (!%p2708_p0), %s2702_s6, 1024, %s2704_s8, %s2713_s10, %s2604_s5, %s2604_s5, %s2605_s7  }
  0x2e   : > { %p173_p12 = scmp.lt.s32.totalorder %s2601_s17, 3  ;;  %p3182_p1 = scmp.ge.s32.totalorder %s2601_s17, 1 }
  0x30   : > { %p174_p3 = pnand %p3182_p1, %p173_p12 }
  0x31   : > { %s2745_s11 = sand.u32 (!%p174_p3), 1, %s2585_s13  }
  0x32   : > { %177 = sbr.rel (%p174_p3) target bundleno = 345 (0x159), region = 32  ;;  %s2232_s18 = sshll.u32 (!%p174_p3), %s2745_s11, 6 }
  0x33   : > { %s180_s19 = scalar_lea.sflag (!%p174_p3), [#allocation3], %s2745_s11  ;;  %s2749_s21 = scalar_lea.vmem (!%p174_p3), [#allocation2], %s2232_s18 }
  0x39   : > { %2572 = dma.done.wait (%p2680_p8), %s180_s19, 1024  }
  0x3a   : > { %2574 = vsyncadd (%p2680_p8), %s180_s19, 4294966272  ;;  %v2606_v0 = vmov 0.0   ;;  %vm2607_vm0 = vmmov 0   ;;  %v2608_v1 = vmov 0   ;;  %vm224_vm1 = vcmask 1041409   ;;  %v2771_v12 = vld [vmem:[%s3173_s1 + $0x18] sm:$0xff] }
  0x3b   : > { %2328 = vmatprep.subr.mxu0 %v2606_v0  ;;  %2333 = vmatprep.subr.mxu1 %v2606_v0  ;;  %vm227_vm2 = vcmask 1042434   ;;  %v213_v2 = vld [vmem:[%s2749_s21 + $0x1] sm:$0x1]  ;;  %v214_v3 = vld [vmem:[%s2749_s21 + $0x11] sm:$0x1]  ;;  %vm230_vm3 = vcmask 1043459  }
  0x3c   : > { %2330 = vmatprep.mubr.msk.f32.mxu0 %vm2607_vm0, %v2606_v0  ;;  %2335 = vmatprep.mubr.msk.f32.mxu1 %vm2607_vm0, %v2606_v0  ;;  %v215_v4 = vld [vmem:[%s2749_s21 + $0x21] sm:$0x1]  ;;  %v216_v5 = vld [vmem:[%s2749_s21 + $0x31] sm:$0x1]  ;;  %v223_v6 = vrot.slane %v214_v3, 7  ;;  %vm236_vm4 = vcmask 1043456  }
  0x3d   : > { %2488 = vset.pattern.permute.xlu0 %v2608_v1  ;;  %v226_v7 = vrot.slane %v215_v4, 6  ;;  %v229_v8 = vrot.slane %v216_v5, 5  ;;  %vm232_vm5 = vcmask 31744   ;;  %v207_v9 = vld [vmem:[%s2749_s21] sm:$0x1]  ;;  %v2783_v23 = vld [vmem:[%s3173_s1 + $0x10] sm:$0xff] }
  0x3e   : > { %v208_v10 = vld [vmem:[%s2749_s21 + $0x10] sm:$0x1]  ;;  %v225_v11 = vsel %vm224_vm1, %v223_v6, %v213_v2  ;;  %v209_v13 = vld [vmem:[%s2749_s21 + $0x20] sm:$0x1]  ;;  %v394_v19 = vld [vmem:[%s2749_s21 + $0x2] sm:$0x1] }
  0x3f   : > { %v210_v14 = vld [vmem:[%s2749_s21 + $0x30] sm:$0x1]  ;;  %v313_v15 = vrot.slane %v208_v10, 7  ;;  %v228_v16 = vsel %vm227_vm2, %v226_v7, %v225_v11  ;;  %v315_v17 = vrot.slane %v209_v13, 6  ;;  %v395_v20 = vld [vmem:[%s2749_s21 + $0x12] sm:$0x1] }
  0x40   : > { %v317_v18 = vrot.slane %v210_v14, 5  ;;  %v231_v21 = vsel %vm230_vm3, %v229_v8, %v228_v16  ;;  %v396_v24 = vld [vmem:[%s2749_s21 + $0x22] sm:$0x1]  ;;  %v397_v25 = vld [vmem:[%s2749_s21 + $0x32] sm:$0x1]  ;;  %v404_v26 = vrot.slane %v395_v20, 7 }
  0x41   : > { %v314_v22 = vsel %vm224_vm1, %v313_v15, %v207_v9  ;;  %2329 = vmatpush3.msk.msra.mxu0 %vm236_vm4, %v231_v21  ;;  %v406_v28 = vrot.slane %v396_v24, 6  ;;  %v408_v29 = vrot.slane %v397_v25, 5  ;;  %v565_v30 = vld [vmem:[%s2749_s21 + $0x3] sm:$0x1]  ;;  %v566_v31 = vld [vmem:[%s2749_s21 + $0x13] sm:$0x1] }
  0x42   : > { %v316_v27 = vsel %vm227_vm2, %v315_v17, %v314_v22  ;;  %2331 = vmatmul.mubr.msk.f32.vlgmr.msra.gmra.mrb[0].mxu0 %vm232_vm5, %v2771_v12  ;;  %2338 = vmatprep.subr.mxu0 %v2606_v0  ;;  %v405_v33 = vsel %vm224_vm1, %v404_v26, %v394_v19  ;;  %v567_v34 = vld [vmem:[%s2749_s21 + $0x23] sm:$0x1]  ;;  %v568_v35 = vld [vmem:[%s2749_s21 + $0x33] sm:$0x1]  ;;  %v575_v36 = vrot.slane %v566_v31, 7  ;;  %v2817_v45 = vld [vmem:[%s3173_s1 + $0x8] sm:$0xff] }
  0x43   : > { %v318_v32 = vsel %vm230_vm3, %v317_v18, %v316_v27  ;;  %v2801_v37 = vld [vmem:[%s3173_s1 + $0x20] sm:$0xff]  ;;  %v407_v38 = vsel %vm227_vm2, %v406_v28, %v405_v33  ;;  %2340 = vmatprep.mubr.msk.f32.mxu0 %vm2607_vm0, %v2606_v0  ;;  %v577_v39 = vrot.slane %v567_v34, 6  ;;  %v579_v40 = vrot.slane %v568_v35, 5  ;;  %v561_v42 = vld [vmem:[%s2749_s21 + $0x12] sm:$0x1]  ;;  %s2233_s7 = sshll.u32 %s2745_s11, 5 }
  0x44   : > { %2334 = vmatpush3.msk.msra.mxu1 %vm236_vm4, %v318_v32  ;;  %v560_v41 = vld [vmem:[%s2749_s21 + $0x2] sm:$0x1]  ;;  %v409_v43 = vsel %vm230_vm3, %v408_v29, %v407_v38  ;;  %v576_v44 = vsel %vm224_vm1, %v575_v36, %v565_v30  ;;  %v563_v47 = vld [vmem:[%s2749_s21 + $0x32] sm:$0x1]  ;;  %v660_v48 = vrot.slane %v561_v42, 7  ;;  %vm551_vm6 = vcmask 516096  }
  0x45   : > { %2336 = vmatmul.mubr.msk.f32.vlgmr.msra.gmra.mrb[0].mxu1 %vm232_vm5, %v2783_v23  ;;  %2343 = vmatprep.subr.mxu1 %v2606_v0  ;;  %v562_v46 = vld [vmem:[%s2749_s21 + $0x22] sm:$0x1]  ;;  %v578_v49 = vsel %vm227_vm2, %v577_v39, %v576_v44  ;;  %v664_v51 = vrot.slane %v563_v47, 5  ;;  %v741_v52 = vld [vmem:[%s2749_s21 + $0x4] sm:$0x1]  ;;  %s3028_s18 = scalar_lea.vmem [#allocation5], %s2233_s7 }
  0x46   : > { %2339 = vmatpush3.msk.msra.mxu0 %vm236_vm4, %v409_v43  ;;  %2345 = vmatprep.mubr.msk.f32.mxu1 %vm2607_vm0, %v2606_v0  ;;  %v662_v50 = vrot.slane %v562_v46, 6  ;;  %v742_v53 = vld [vmem:[%s2749_s21 + $0x14] sm:$0x1]  ;;  %v580_v54 = vsel %vm230_vm3, %v579_v40, %v578_v49  ;;  %v661_v55 = vsel %vm224_vm1, %v660_v48, %v560_v41  ;;  %v743_v56 = vld [vmem:[%s2749_s21 + $0x24] sm:$0x1]  ;;  %s2291_s19 = sshll.u32 %s2593_s15, 9 }
  0x47   : > { %2341 = vmatmul.mubr.msk.f32.vlgmr.msra.gmra.mrb[2].mxu0 %vm232_vm5, %v2801_v37  ;;  %2348 = vmatprep.subr.mxu0 %v2606_v0  ;;  %v744_v57 = vld [vmem:[%s2749_s21 + $0x34] sm:$0x1]  ;;  %v750_v58 = vrot.slane %v742_v53, 7  ;;  %v2837_v59 = vld [vmem:[%s3173_s1] sm:$0xff]  ;;  %v752_v61 = vrot.slane %v743_v56, 6  ;;  %s3113_s8 = scalar_lea.hbm %s3175_s3, %s2291_s19  ;;  %s2125_s15 = scalar_lea.sflag [#allocation4], %s2745_s11 }
  0x48   : > { %2344 = vmatpush3.msk.msra.mxu1 %vm236_vm4, %v580_v54  ;;  %v663_v60 = vsel %vm227_vm2, %v662_v50, %v661_v55  ;;  %2350 = vmatprep.mubr.msk.f32.mxu0 %vm2607_vm0, %v2606_v0  ;;  %v754_v62 = vrot.slane %v744_v57, 5  ;;  %v832_v63 = vld [vmem:[%s2749_s21 + $0x5] sm:$0x1]  ;;  %v833_v1 = vld [vmem:[%s2749_s21 + $0x15] sm:$0x1]  ;;  %p3183_p9 = scmp.ne.s32.totalorder %s3179_s25, 0 }
  0x49   : > { %2346 = vmatmul.mubr.msk.f32.vlgmr.msra.gmra.mrb[2].mxu1 %vm232_vm5, %v2817_v45  ;;  %v665_v2 = vsel %vm230_vm3, %v664_v51, %v663_v60  ;;  %2353 = vmatprep.subr.mxu1 %v2606_v0  ;;  %v751_v3 = vsel %vm224_vm1, %v750_v58, %v741_v52  ;;  %v834_v4 = vld [vmem:[%s2749_s21 + $0x25] sm:$0x1]  ;;  %v835_v5 = vld [vmem:[%s2749_s21 + $0x35] sm:$0x1]  ;;  %v841_v6 = vrot.slane %v833_v1, 7  ;;  %s2610_s10 = smov [#allocation5]  }
  0x4a   : > { %2349 = vmatpush3.msk.msra.mxu0 %vm236_vm4, %v665_v2  ;;  %v753_v7 = vsel %vm227_vm2, %v752_v61, %v751_v3  ;;  %2355 = vmatprep.mubr.msk.f32.mxu1 %vm2607_vm0, %v2606_v0  ;;  %v843_v8 = vrot.slane %v834_v4, 6  ;;  %v845_v9 = vrot.slane %v835_v5, 5  ;;  %v923_v10 = vld [vmem:[%s2749_s21 + $0x6] sm:$0x1]  ;;  %v924_v11 = vld [vmem:[%s2749_s21 + $0x16] sm:$0x1] }
  0x4b   : > { %v755_v13 = vsel %vm230_vm3, %v754_v62, %v753_v7  ;;  %2351 = vmatmul.mubr.msk.f32.vlgmr.msra.gmra.mrb[4].mxu0 %vm232_vm5, %v2837_v59  ;;  %2358 = vmatprep.subr.mxu0 %v2606_v0  ;;  %v842_v14 = vsel %vm224_vm1, %v841_v6, %v832_v63  ;;  %v925_v15 = vld [vmem:[%s2749_s21 + $0x26] sm:$0x1]  ;;  %v926_v16 = vld [vmem:[%s2749_s21 + $0x36] sm:$0x1]  ;;  %v932_v17 = vrot.slane %v924_v11, 7  ;;  %s2523_s22 = sshll.u32 %s2610_s10, 4  ;;  %s2524_s22 = int_to_ptr.vmem [resolvable:$false] %s2523_s22 }
  0x4c   : > { %2354 = vmatpush3.msk.msra.mxu1 %vm236_vm4, %v755_v13  ;;  %v844_v18 = vsel %vm227_vm2, %v843_v8, %v842_v14  ;;  %2360 = vmatprep.mubr.msk.f32.mxu0 %vm2607_vm0, %v2606_v0  ;;  %v934_v19 = vrot.slane %v925_v15, 6  ;;  %v936_v20 = vrot.slane %v926_v16, 5  ;;  %v1087_v21 = vld [vmem:[%s2749_s21 + $0x7] sm:$0x1]  ;;  %v1088_v22 = vld [vmem:[%s2749_s21 + $0x17] sm:$0x1] }
  0x4d   : > { %2356 = vmatmul.mubr.msk.f32.vlgmr.msra.gmra.mrb[4].mxu1 %vm232_vm5, %v2783_v23  ;;  %v846_v24 = vsel %vm230_vm3, %v845_v9, %v844_v18  ;;  %2363 = vmatprep.subr.mxu1 %v2606_v0  ;;  %v933_v25 = vsel %vm224_vm1, %v932_v17, %v923_v10  ;;  %v1089_v26 = vld [vmem:[%s2749_s21 + $0x27] sm:$0x1]  ;;  %v1090_v27 = vld [vmem:[%s2749_s21 + $0x37] sm:$0x1]  ;;  %v1096_v28 = vrot.slane %v1088_v22, 7  ;;  %s2525_s23 = scalar_lea.vmem %s2524_s22, 1024 }
  0x4e   : > { %2359 = vmatpush3.msk.msra.mxu0 %vm236_vm4, %v846_v24  ;;  %v935_v29 = vsel %vm227_vm2, %v934_v19, %v933_v25  ;;  %2365 = vmatprep.mubr.msk.f32.mxu1 %vm2607_vm0, %v2606_v0  ;;  %v1098_v30 = vrot.slane %v1089_v26, 6  ;;  %v1100_v31 = vrot.slane %v1090_v27, 5  ;;  %v1082_v32 = vld [vmem:[%s2749_s21 + $0x6] sm:$0x1]  ;;  %v1083_v33 = vld [vmem:[%s2749_s21 + $0x16] sm:$0x1] }
  0x4f   : > { %v937_v34 = vsel %vm230_vm3, %v936_v20, %v935_v29  ;;  %2361 = vmatmul.mubr.msk.f32.vlgmr.msra.gmra.mrb[6].mxu0 %vm232_vm5, %v2771_v12  ;;  %2368 = vmatprep.subr.mxu0 %v2606_v0  ;;  %v1097_v35 = vsel %vm224_vm1, %v1096_v28, %v1087_v21  ;;  %v1084_v36 = vld [vmem:[%s2749_s21 + $0x26] sm:$0x1]  ;;  %v1085_v38 = vld [vmem:[%s2749_s21 + $0x36] sm:$0x1]  ;;  %v1181_v39 = vrot.slane %v1083_v33, 7 }
  0x50   : > { %2364 = vmatpush3.msk.msra.mxu1 %vm236_vm4, %v937_v34  ;;  %v1099_v40 = vsel %vm227_vm2, %v1098_v30, %v1097_v35  ;;  %2370 = vmatprep.mubr.msk.f32.mxu0 %vm2607_vm0, %v2606_v0  ;;  %v1183_v41 = vrot.slane %v1084_v36, 6  ;;  %v1185_v42 = vrot.slane %v1085_v38, 5  ;;  %v1262_v43 = vld [vmem:[%s2749_s21 + $0x8] sm:$0x1]  ;;  %v1263_v44 = vld [vmem:[%s2749_s21 + $0x18] sm:$0x1] }
  0x51   : > { %2366 = vmatmul.mubr.msk.f32.vlgmr.msra.gmra.mrb[6].mxu1 %vm232_vm5, %v2801_v37  ;;  %v1101_v46 = vsel %vm230_vm3, %v1100_v31, %v1099_v40  ;;  %2373 = vmatprep.subr.mxu1 %v2606_v0  ;;  %v1182_v47 = vsel %vm224_vm1, %v1181_v39, %v1082_v32  ;;  %v1264_v48 = vld [vmem:[%s2749_s21 + $0x28] sm:$0x1]  ;;  %v1265_v49 = vld [vmem:[%s2749_s21 + $0x38] sm:$0x1]  ;;  %v1271_v50 = vrot.slane %v1263_v44, 7 }
  0x52   : > { %2369 = vmatpush3.msk.msra.mxu0 %vm236_vm4, %v1101_v46  ;;  %v1184_v51 = vsel %vm227_vm2, %v1183_v41, %v1182_v47  ;;  %2375 = vmatprep.mubr.msk.f32.mxu1 %vm2607_vm0, %v2606_v0  ;;  %v1273_v52 = vrot.slane %v1264_v48, 6  ;;  %v1275_v53 = vrot.slane %v1265_v49, 5  ;;  %v1353_v54 = vld [vmem:[%s2749_s21 + $0x9] sm:$0x1]  ;;  %v1354_v55 = vld [vmem:[%s2749_s21 + $0x19] sm:$0x1] }
  0x53   : > { %v1186_v56 = vsel %vm230_vm3, %v1185_v42, %v1184_v51  ;;  %2371 = vmatmul.mubr.msk.f32.vlgmr.msra.gmra.mrb[8].mxu0 %vm232_vm5, %v2817_v45  ;;  %2378 = vmatprep.subr.mxu0 %v2606_v0  ;;  %v1272_v57 = vsel %vm224_vm1, %v1271_v50, %v1262_v43  ;;  %v1355_v58 = vld [vmem:[%s2749_s21 + $0x29] sm:$0x1]  ;;  %v1356_v60 = vld [vmem:[%s2749_s21 + $0x39] sm:$0x1]  ;;  %v1362_v61 = vrot.slane %v1354_v55, 7 }
  0x54   : > { %2374 = vmatpush3.msk.msra.mxu1 %vm236_vm4, %v1186_v56  ;;  %v1274_v62 = vsel %vm227_vm2, %v1273_v52, %v1272_v57  ;;  %2380 = vmatprep.mubr.msk.f32.mxu0 %vm2607_vm0, %v2606_v0  ;;  %v1364_v63 = vrot.slane %v1355_v58, 6  ;;  %v1366_v1 = vrot.slane %v1356_v60, 5  ;;  %v1444_v2 = vld [vmem:[%s2749_s21 + $0xa] sm:$0x1]  ;;  %v1445_v3 = vld [vmem:[%s2749_s21 + $0x1a] sm:$0x1] }
  0x55   : > { %2376 = vmatmul.mubr.msk.f32.vlgmr.msra.gmra.mrb[8].mxu1 %vm232_vm5, %v2837_v59  ;;  %v1276_v4 = vsel %vm230_vm3, %v1275_v53, %v1274_v62  ;;  %2383 = vmatprep.subr.mxu1 %v2606_v0  ;;  %v1363_v5 = vsel %vm224_vm1, %v1362_v61, %v1353_v54  ;;  %v1446_v6 = vld [vmem:[%s2749_s21 + $0x2a] sm:$0x1]  ;;  %v1447_v7 = vld [vmem:[%s2749_s21 + $0x3a] sm:$0x1]  ;;  %v1453_v8 = vrot.slane %v1445_v3, 7 }
  0x56   : > { %2379 = vmatpush3.msk.msra.mxu0 %vm236_vm4, %v1276_v4  ;;  %v1365_v9 = vsel %vm227_vm2, %v1364_v63, %v1363_v5  ;;  %2385 = vmatprep.mubr.msk.f32.mxu1 %vm2607_vm0, %v2606_v0  ;;  %v1455_v10 = vrot.slane %v1446_v6, 6  ;;  %v1457_v11 = vrot.slane %v1447_v7, 5  ;;  %v1608_v13 = vld [vmem:[%s2749_s21 + $0xb] sm:$0x1]  ;;  %v1609_v14 = vld [vmem:[%s2749_s21 + $0x1b] sm:$0x1] }
  0x57   : > { %v1367_v15 = vsel %vm230_vm3, %v1366_v1, %v1365_v9  ;;  %2381 = vmatmul.mubr.msk.f32.vlgmr.msra.gmra.mrb[10].mxu0 %vm232_vm5, %v2783_v23  ;;  %2388 = vmatprep.subr.mxu0 %v2606_v0  ;;  %v1454_v16 = vsel %vm224_vm1, %v1453_v8, %v1444_v2  ;;  %v1610_v17 = vld [vmem:[%s2749_s21 + $0x2b] sm:$0x1]  ;;  %v1611_v18 = vld [vmem:[%s2749_s21 + $0x3b] sm:$0x1]  ;;  %v1617_v19 = vrot.slane %v1609_v14, 7  ;;  %v498_v8 = vlaneseq }
  0x58   : > { %2384 = vmatpush3.msk.msra.mxu1 %vm236_vm4, %v1367_v15  ;;  %v1456_v20 = vsel %vm227_vm2, %v1455_v10, %v1454_v16  ;;  %2390 = vmatprep.mubr.msk.f32.mxu0 %vm2607_vm0, %v2606_v0  ;;  %v1619_v21 = vrot.slane %v1610_v17, 6  ;;  %v1621_v22 = vrot.slane %v1611_v18, 5  ;;  %v1603_v24 = vld [vmem:[%s2749_s21 + $0xa] sm:$0x1]  ;;  %v1604_v25 = vld [vmem:[%s2749_s21 + $0x1a] sm:$0x1] }
  0x59   : > { %v1458_v26 = vsel %vm230_vm3, %v1457_v11, %v1456_v20  ;;  %2386 = vmatmul.mubr.msk.f32.vlgmr.msra.gmra.mrb[10].mxu1 %vm232_vm5, %v2771_v12  ;;  %2393 = vmatprep.subr.mxu1 %v2606_v0  ;;  %v1618_v27 = vsel %vm224_vm1, %v1617_v19, %v1608_v13  ;;  %v1605_v28 = vld [vmem:[%s2749_s21 + $0x2a] sm:$0x1]  ;;  %v1606_v29 = vld [vmem:[%s2749_s21 + $0x3a] sm:$0x1]  ;;  %v1702_v30 = vrot.slane %v1604_v25, 7  ;;  %v499_v15 = vshrl.u32 %v498_v8, 7 }
  0x5a   : > { %2389 = vmatpush3.msk.msra.mxu0 %vm236_vm4, %v1458_v26  ;;  %v1620_v31 = vsel %vm227_vm2, %v1619_v21, %v1618_v27  ;;  %2395 = vmatprep.mubr.msk.f32.mxu1 %vm2607_vm0, %v2606_v0  ;;  %v1704_v32 = vrot.slane %v1605_v28, 6  ;;  %v1706_v33 = vrot.slane %v1606_v29, 5  ;;  %v1783_v34 = vld [vmem:[%s2749_s21 + $0xc] sm:$0x1]  ;;  %v1784_v35 = vld [vmem:[%s2749_s21 + $0x1c] sm:$0x1] }
  0x5b   : > { %v1622_v36 = vsel %vm230_vm3, %v1621_v22, %v1620_v31  ;;  %2391 = vmatmul.mubr.msk.f32.vlgmr.msra.gmra.mrb[12].mxu0 %vm232_vm5, %v2801_v37  ;;  %2398 = vmatprep.subr.mxu0 %v2606_v0  ;;  %v1703_v38 = vsel %vm224_vm1, %v1702_v30, %v1603_v24  ;;  %v1785_v39 = vld [vmem:[%s2749_s21 + $0x2c] sm:$0x1]  ;;  %v1786_v40 = vld [vmem:[%s2749_s21 + $0x3c] sm:$0x1]  ;;  %v1792_v41 = vrot.slane %v1784_v35, 7 }
  0x5c   : > { %2394 = vmatpush3.msk.msra.mxu1 %vm236_vm4, %v1622_v36  ;;  %v1705_v42 = vsel %vm227_vm2, %v1704_v32, %v1703_v38  ;;  %2400 = vmatprep.mubr.msk.f32.mxu0 %vm2607_vm0, %v2606_v0  ;;  %v1794_v43 = vrot.slane %v1785_v39, 6  ;;  %v1796_v44 = vrot.slane %v1786_v40, 5  ;;  %v1874_v46 = vld [vmem:[%s2749_s21 + $0xd] sm:$0x1]  ;;  %v1875_v47 = vld [vmem:[%s2749_s21 + $0x1d] sm:$0x1] }
  0x5d   : > { %v1707_v48 = vsel %vm230_vm3, %v1706_v33, %v1705_v42  ;;  %2396 = vmatmul.mubr.msk.f32.vlgmr.msra.gmra.mrb[12].mxu1 %vm232_vm5, %v2817_v45  ;;  %2403 = vmatprep.subr.mxu1 %v2606_v0  ;;  %v1793_v49 = vsel %vm224_vm1, %v1792_v41, %v1783_v34  ;;  %v1876_v50 = vld [vmem:[%s2749_s21 + $0x2d] sm:$0x1]  ;;  %v1877_v51 = vld [vmem:[%s2749_s21 + $0x3d] sm:$0x1]  ;;  %v1883_v52 = vrot.slane %v1875_v47, 7 }
  0x5e   : > { %2399 = vmatpush3.msk.msra.mxu0 %vm236_vm4, %v1707_v48  ;;  %v1795_v53 = vsel %vm227_vm2, %v1794_v43, %v1793_v49  ;;  %2405 = vmatprep.mubr.msk.f32.mxu1 %vm2607_vm0, %v2606_v0  ;;  %v1885_v54 = vrot.slane %v1876_v50, 6  ;;  %v1887_v55 = vrot.slane %v1877_v51, 5  ;;  %v1965_v56 = vld [vmem:[%s2749_s21 + $0xe] sm:$0x1]  ;;  %v1966_v45 = vld [vmem:[%s2749_s21 + $0x1e] sm:$0x1] }
  0x5f   : > { %v1797_v57 = vsel %vm230_vm3, %v1796_v44, %v1795_v53  ;;  %2401 = vmatmul.mubr.msk.f32.vlgmr.msra.gmra.mrb[14].mxu0 %vm232_vm5, %v2837_v59  ;;  %2408 = vmatprep.subr.mxu0 %v2606_v0  ;;  %v1884_v58 = vsel %vm224_vm1, %v1883_v52, %v1874_v46  ;;  %v1967_v60 = vld [vmem:[%s2749_s21 + $0x2e] sm:$0x1]  ;;  %v1968_v61 = vld [vmem:[%s2749_s21 + $0x3e] sm:$0x1]  ;;  %v1974_v62 = vrot.slane %v1966_v45, 7  ;;  %v206_v59 = vld [vmem:[%s3174_s2] sm:$0xff] }
  0x60   : > { %2404 = vmatpush3.msk.msra.mxu1 %vm236_vm4, %v1797_v57  ;;  %v1886_v63 = vsel %vm227_vm2, %v1885_v54, %v1884_v58  ;;  %2410 = vmatprep.mubr.msk.f32.mxu0 %vm2607_vm0, %v2606_v0  ;;  %v1976_v1 = vrot.slane %v1967_v60, 6  ;;  %v1978_v2 = vrot.slane %v1968_v61, 5  ;;  %s2139_s21 = sshll.u32 %s3028_s18, 4  ;;  %s3115_s21 = int_to_ptr.vmem [resolvable:$true] %s2139_s21 }
  0x61   : > { %v1888_v3 = vsel %vm230_vm3, %v1887_v55, %v1886_v63  ;;  %2406 = vmatmul.mubr.msk.f32.vlgmr.msra.gmra.mrb[14].mxu1 %vm232_vm5, %v2783_v23  ;;  %2413 = vmatprep.subr.mxu1 %v2606_v0  ;;  %v1975_v4 = vsel %vm224_vm1, %v1974_v62, %v1965_v56  ;;  %v2609_v23 = vmov 1966171168   ;;  %s2519_s9 = scalar_lea.vmem %s3115_s21, 512  ;;  %p2526_p6 = scmp.lt.s32.totalorder %s3115_s21, %s2524_s22 }
  0x62   : > { %2409 = vmatpush3.msk.msra.mxu0 %vm236_vm4, %v1888_v3  ;;  %v1977_v5 = vsel %vm227_vm2, %v1976_v1, %v1975_v4  ;;  %2415 = vmatprep.mubr.msk.f32.mxu1 %vm2607_vm0, %v2606_v0  ;;  %v496_v7 = vunpack.c.l.s4 %v2609_v23  ;;  %p2520_p8 = scmp.ne.s32.totalorder %s3115_s21, %s2519_s9  ;;  %p2527_p13 = scmp.lt.s32.totalorder %s2525_s23, %s2519_s9 }
  0x63   : > { %v1979_v6 = vsel %vm230_vm3, %v1978_v2, %v1977_v5  ;;  %2411 = vmatmul.mubr.msk.f32.vlgmr.msra.gmra.mrb[16].mxu0 %vm232_vm5, %v2771_v12  ;;  %488 = vperm.xlu0 %2488, %v206_v59  }
  0x64   : > { %2414 = vmatpush3.msk.msra.mxu1 %vm236_vm4, %v1979_v6  ;;  %v497_v14 = vunpack.c.0.s8 %v496_v7  ;;  %p2521_p11 = pnand %p2520_p8, %p3183_p9  ;;  %p2528_p2 = por %p2527_p13, %p2526_p6 }
  0x65   : > { %2416 = vmatmul.mubr.msk.f32.vlgmr.msra.gmra.mrb[16].mxu1 %vm232_vm5, %v2801_v37 }
  0x66   : > { %v3019_v20 = vsub.s32 %v497_v14, %v499_v15  ;;  %p2522_p0 = pneg %p2521_p11 }
  0x68   : > { %p2529_p5 = pnand %p2528_p2, %p2522_p0 }
  0xe2   : > { %v3017_v17 = vpop.permute.xlu0 %488 }
 0x115   : > { %v305_v9 = vpop.f32.mrb[0].mxu0 }
 0x116   : > { %v2332_v10 = vpop.f32.mrb[1].mxu0 }
 0x118   : > { %v390_v11 = vpop.f32.mrb[0].mxu1 }
 0x119   : > { %v391_v13 = vadd.f32 %v390_v11, %v305_v9  ;;  %v2337_v0 = vpop.f32.mrb[1].mxu1 }
 0x11a   : > { %v481_v16 = vpop.f32.mrb[2].mxu0 }
 0x11b   : > { %v485_v12 = vadd.f32 %v481_v16, %v391_v13  ;;  %v2342_v18 = vpop.f32.mrb[3].mxu0 }
 0x11c   : > { %v652_v19 = vpop.f32.mrb[2].mxu1 }
 0x11d   : > { %v491_v37 = vadd.f32 %v3017_v17, %v485_v12  ;;  %v2347_v21 = vpop.f32.mrb[3].mxu1 }
 0x11e   : > { %v737_v22 = vpop.f32.mrb[4].mxu0 }
 0x11f   : > { %v492_v24 = vmax.f32 %v491_v37, 0.0  ;;  %v738_v25 = vadd.f32 %v737_v22, %v652_v19  ;;  %v2352_v26 = vpop.f32.mrb[5].mxu0 }
 0x120   : > { %v827_v27 = vpop.f32.mrb[4].mxu1 }
 0x121   : > { %v494_v28 = vcombine.high %v492_v24, %v492_v24  ;;  %v501_v29 = vrot.slane %v492_v24, %v3019_v20  ;;  %v831_v30 = vadd.f32 %v827_v27, %v738_v25  ;;  %v2357_v31 = vpop.f32.mrb[5].mxu1 }
 0x122   : > { %v918_v32 = vpop.f32.mrb[6].mxu0 }
 0x123   : > { %v508_v33 = vrot.slane %v494_v28, %v3019_v20  ;;  %v509_v34 = vcombine.high %v501_v29, %v501_v29  ;;  %v517_v35 = vrot.slane %v501_v29, %v3019_v20  ;;  %v922_v36 = vadd.f32 %v918_v32, %v831_v30  ;;  %v2362_v38 = vpop.f32.mrb[7].mxu0 }
 0x124   : > { %v1009_v39 = vpop.f32.mrb[6].mxu1 }
 0x125   : > { %v510_v40 = vcombine.high %v508_v33, %v508_v33  ;;  %v524_v41 = vrot.slane %v508_v33, %v3019_v20  ;;  %v531_v42 = vrot.slane %v509_v34, %v3019_v20  ;;  %v539_v43 = vcombine.high %v517_v35, %v517_v35  ;;  %552 = vst.msk [vmem:[%s3028_s18] sm:$0x1] %vm551_vm6, %v517_v35  ;;  %v2367_v44 = vpop.f32.mrb[7].mxu1 }
 0x126   : > { %v1013_v46 = vadd.f32 %v1009_v39, %v922_v36  ;;  %v1173_v47 = vpop.f32.mrb[8].mxu0 }
 0x127   : > { %v538_v48 = vrot.slane %v510_v40, %v3019_v20  ;;  %v540_v49 = vcombine.high %v524_v41, %v524_v41  ;;  %v541_v50 = vcombine.high %v531_v42, %v531_v42  ;;  %553 = vst.msk [vmem:[%s3028_s18 + $0x4] sm:$0x1] %vm551_vm6, %v531_v42  ;;  %554 = vst.msk [vmem:[%s3028_s18 + $0x8] sm:$0x1] %vm551_vm6, %v539_v43  ;;  %v2372_v51 = vpop.f32.mrb[9].mxu0 }
 0x128   : > { %556 = vst.msk [vmem:[%s3028_s18 + $0x10] sm:$0x1] %vm551_vm6, %v524_v41  ;;  %v1014_v52 = vadd.f32 %v1013_v46, %v3017_v17  ;;  %v1258_v53 = vpop.f32.mrb[8].mxu1 }
 0x129   : > { %v542_v54 = vcombine.high %v538_v48, %v538_v48  ;;  %555 = vst.msk [vmem:[%s3028_s18 + $0xc] sm:$0x1] %vm551_vm6, %v541_v50  ;;  %557 = vst.msk [vmem:[%s3028_s18 + $0x14] sm:$0x1] %vm551_vm6, %v538_v48  ;;  %v1259_v55 = vadd.f32 %v1258_v53, %v1173_v47  ;;  %v2377_v56 = vpop.f32.mrb[9].mxu1 }
 0x12a   : > { %558 = vst.msk [vmem:[%s3028_s18 + $0x18] sm:$0x1] %vm551_vm6, %v540_v49  ;;  %v1015_v45 = vmax.f32 %v1014_v52, 0.0  ;;  %v1348_v57 = vpop.f32.mrb[10].mxu0 }
 0x12b   : > { %559 = vst.msk [vmem:[%s3028_s18 + $0x1c] sm:$0x1] %vm551_vm6, %v542_v54  ;;  %v1352_v58 = vadd.f32 %v1348_v57, %v1259_v55  ;;  %v2382_v60 = vpop.f32.mrb[11].mxu0 }
 0x12c   : > { %v1017_v61 = vcombine.high %v1015_v45, %v1015_v45  ;;  %v1024_v62 = vrot.slane %v1015_v45, %v3019_v20  ;;  %v1439_v63 = vpop.f32.mrb[10].mxu1 }
 0x12d   : > { %v1443_v1 = vadd.f32 %v1439_v63, %v1352_v58  ;;  %v2387_v2 = vpop.f32.mrb[11].mxu1 }
 0x12e   : > { %v1031_v59 = vrot.slane %v1017_v61, %v3019_v20  ;;  %v1032_v3 = vcombine.high %v1024_v62, %v1024_v62  ;;  %v1040_v4 = vrot.slane %v1024_v62, %v3019_v20  ;;  %v1530_v5 = vpop.f32.mrb[12].mxu0 }
 0x12f   : > { %v1534_v6 = vadd.f32 %v1530_v5, %v1443_v1  ;;  %v2392_v23 = vpop.f32.mrb[13].mxu0 }
 0x130   : > { %v1033_v7 = vcombine.high %v1031_v59, %v1031_v59  ;;  %v1047_v8 = vrot.slane %v1031_v59, %v3019_v20  ;;  %v1054_v9 = vrot.slane %v1032_v3, %v3019_v20  ;;  %v1062_v10 = vcombine.high %v1040_v4, %v1040_v4  ;;  %1074 = vst.msk [vmem:[%s3028_s18 + $0x1] sm:$0x1] %vm551_vm6, %v1040_v4  ;;  %v1694_v11 = vpop.f32.mrb[12].mxu1 }
 0x131   : > { %v1535_v13 = vadd.f32 %v1534_v6, %v3017_v17  ;;  %v2397_v0 = vpop.f32.mrb[13].mxu1 }
 0x132   : > { %v1061_v14 = vrot.slane %v1033_v7, %v3019_v20  ;;  %v1063_v15 = vcombine.high %v1047_v8, %v1047_v8  ;;  %v1064_v16 = vcombine.high %v1054_v9, %v1054_v9  ;;  %1075 = vst.msk [vmem:[%s3028_s18 + $0x5] sm:$0x1] %vm551_vm6, %v1054_v9  ;;  %1076 = vst.msk [vmem:[%s3028_s18 + $0x9] sm:$0x1] %vm551_vm6, %v1062_v10  ;;  %v1779_v12 = vpop.f32.mrb[14].mxu0 }
 0x133   : > { %1078 = vst.msk [vmem:[%s3028_s18 + $0x11] sm:$0x1] %vm551_vm6, %v1047_v8  ;;  %v1536_v18 = vmax.f32 %v1535_v13, 0.0  ;;  %v1780_v19 = vadd.f32 %v1779_v12, %v1694_v11  ;;  %v2402_v37 = vpop.f32.mrb[15].mxu0 }
 0x134   : > { %v1065_v21 = vcombine.high %v1061_v14, %v1061_v14  ;;  %1077 = vst.msk [vmem:[%s3028_s18 + $0xd] sm:$0x1] %vm551_vm6, %v1064_v16  ;;  %1079 = vst.msk [vmem:[%s3028_s18 + $0x15] sm:$0x1] %vm551_vm6, %v1061_v14  ;;  %v1869_v22 = vpop.f32.mrb[14].mxu1 }
 0x135   : > { %1080 = vst.msk [vmem:[%s3028_s18 + $0x19] sm:$0x1] %vm551_vm6, %v1063_v15  ;;  %v1538_v24 = vcombine.high %v1536_v18, %v1536_v18  ;;  %v1545_v25 = vrot.slane %v1536_v18, %v3019_v20  ;;  %v1873_v26 = vadd.f32 %v1869_v22, %v1780_v19  ;;  %v2407_v27 = vpop.f32.mrb[15].mxu1 }
 0x136   : > { %1081 = vst.msk [vmem:[%s3028_s18 + $0x1d] sm:$0x1] %vm551_vm6, %v1065_v21  ;;  %v1960_v28 = vpop.f32.mrb[16].mxu0 }
 0x137   : > { %v1552_v29 = vrot.slane %v1538_v24, %v3019_v20  ;;  %v1553_v30 = vcombine.high %v1545_v25, %v1545_v25  ;;  %v1561_v31 = vrot.slane %v1545_v25, %v3019_v20  ;;  %v1964_v32 = vadd.f32 %v1960_v28, %v1873_v26  ;;  %v2412_v33 = vpop.f32.mrb[17].mxu0 }
 0x138   : > { %v2051_v34 = vpop.f32.mrb[16].mxu1 }
 0x139   : > { %v1554_v35 = vcombine.high %v1552_v29, %v1552_v29  ;;  %v1568_v36 = vrot.slane %v1552_v29, %v3019_v20  ;;  %v1575_v38 = vrot.slane %v1553_v30, %v3019_v20  ;;  %v1583_v39 = vcombine.high %v1561_v31, %v1561_v31  ;;  %1595 = vst.msk [vmem:[%s3028_s18 + $0x2] sm:$0x1] %vm551_vm6, %v1561_v31  ;;  %v2417_v40 = vpop.f32.mrb[17].mxu1 }
 0x13a   : > { %v2055_v41 = vadd.f32 %v2051_v34, %v1964_v32 }
 0x13b   : > { %v1582_v42 = vrot.slane %v1554_v35, %v3019_v20  ;;  %v1584_v43 = vcombine.high %v1568_v36, %v1568_v36  ;;  %v1585_v44 = vcombine.high %v1575_v38, %v1575_v38  ;;  %1596 = vst.msk [vmem:[%s3028_s18 + $0x6] sm:$0x1] %vm551_vm6, %v1575_v38  ;;  %1597 = vst.msk [vmem:[%s3028_s18 + $0xa] sm:$0x1] %vm551_vm6, %v1583_v39 }
 0x13c   : > { %1599 = vst.msk [vmem:[%s3028_s18 + $0x12] sm:$0x1] %vm551_vm6, %v1568_v36  ;;  %v2056_v46 = vadd.f32 %v2055_v41, %v3017_v17 }
 0x13d   : > { %v1586_v47 = vcombine.high %v1582_v42, %v1582_v42  ;;  %1598 = vst.msk [vmem:[%s3028_s18 + $0xe] sm:$0x1] %vm551_vm6, %v1585_v44  ;;  %1600 = vst.msk [vmem:[%s3028_s18 + $0x16] sm:$0x1] %vm551_vm6, %v1582_v42 }
 0x13e   : > { %1601 = vst.msk [vmem:[%s3028_s18 + $0x1a] sm:$0x1] %vm551_vm6, %v1584_v43  ;;  %v2057_v48 = vmax.f32 %v2056_v46, 0.0 }
 0x13f   : > { %1602 = vst.msk [vmem:[%s3028_s18 + $0x1e] sm:$0x1] %vm551_vm6, %v1586_v47 }
 0x140   : > { %v2059_v49 = vcombine.high %v2057_v48, %v2057_v48  ;;  %v2066_v50 = vrot.slane %v2057_v48, %v3019_v20 }
 0x142   : > { %v2073_v17 = vrot.slane %v2059_v49, %v3019_v20  ;;  %v2074_v51 = vcombine.high %v2066_v50, %v2066_v50  ;;  %v2082_v52 = vrot.slane %v2066_v50, %v3019_v20 }
 0x144   : > { %v2075_v53 = vcombine.high %v2073_v17, %v2073_v17  ;;  %v2089_v54 = vrot.slane %v2073_v17, %v3019_v20  ;;  %v2096_v55 = vrot.slane %v2074_v51, %v3019_v20  ;;  %v2104_v56 = vcombine.high %v2082_v52, %v2082_v52  ;;  %2116 = vst.msk [vmem:[%s3028_s18 + $0x3] sm:$0x1] %vm551_vm6, %v2082_v52 }
 0x146   : > { %v2103_v45 = vrot.slane %v2075_v53, %v3019_v20  ;;  %v2105_v57 = vcombine.high %v2089_v54, %v2089_v54  ;;  %v2106_v58 = vcombine.high %v2096_v55, %v2096_v55  ;;  %2117 = vst.msk [vmem:[%s3028_s18 + $0x7] sm:$0x1] %vm551_vm6, %v2096_v55  ;;  %2118 = vst.msk [vmem:[%s3028_s18 + $0xb] sm:$0x1] %vm551_vm6, %v2104_v56 }
 0x147   : > { %2120 = vst.msk [vmem:[%s3028_s18 + $0x13] sm:$0x1] %vm551_vm6, %v2089_v54 }
 0x148   : > { %v2107_v20 = vcombine.high %v2103_v45, %v2103_v45  ;;  %2119 = vst.msk [vmem:[%s3028_s18 + $0xf] sm:$0x1] %vm551_vm6, %v2106_v58  ;;  %2121 = vst.msk [vmem:[%s3028_s18 + $0x17] sm:$0x1] %vm551_vm6, %v2103_v45 }
 0x149   : > { %2122 = vst.msk [vmem:[%s3028_s18 + $0x1b] sm:$0x1] %vm551_vm6, %v2105_v57 }
 0x14a   : > { %2123 = vst.msk [vmem:[%s3028_s18 + $0x1f] sm:$0x1] %vm551_vm6, %v2107_v20 }
 0x14b   : > { %2532 = shalt.err (!%p2529_p5)
}
 0x14c   : > { %s2533_s28 = scalar_lea.hbm %s3113_s8, 512  ;;  %s2537_s4 = scalar_lea.hbm %s3175_s3, 1024 }
 0x14d   : > { %p2534_p4 = scmp.ne.s32.totalorder %s3113_s8, %s2533_s28  ;;  %p2538_p12 = scmp.lt.u32.totalorder %s3113_s8, %s3175_s3 }
 0x14e   : > { %p2539_p1 = scmp.lt.u32.totalorder %s2537_s4, %s2533_s28  ;;  %p2541_p8 = scmp.lt.u32.totalorder %s2533_s28, %s3113_s8 }
 0x14f   : > { %p2535_p7 = pnand %p2534_p4, %p3183_p9 }
 0x150   : > { %p2540_p3 = por %p2539_p1, %p2538_p12 }
 0x151   : > { %p2536_p10 = pneg %p2535_p7 }
 0x152   : > { %p2542_p11 = por %p2541_p8, %p2540_p3 }
 0x154   : > { %p2543_p0 = pnand %p2542_p11, %p2536_p10 }
 0x156   : > { %2546 = shalt.err (!%p2543_p0)
}
 0x157   : > { %s2611_s18 = smov 64   ;;  %s2612_s19 = smov 4  }
 0x158   : > { %2420 = dma.vmem_to_hbm [thread:$0]  (%p3183_p9), %s3115_s21, 512, %s3113_s8, %s2125_s15, %s2611_s18, %s2611_s18, %s2612_s19  }
 0x159 PF: > { %s2154_s24 = sand.u32 1, %s2581_s12   ;;  %p3184_p6 = scmp.ne.s32.totalorder %s3180_s27, 0 }
 0x15a   : > { %p3185_p13 = scmp.ge.s32.totalorder %s2601_s17, 2  ;;  %s2155_s6 = scalar_lea.sflag [#allocation4], %s2154_s24 }
 0x15c   : > { %p2427_p2 = pnand %p3185_p13, %p3184_p6 }
 0x15e   : > { %2576 = dma.done.wait (!%p2427_p2), %s2155_s6, 512  }
 0x15f   : > { %2578 = vsyncadd (!%p2427_p2), %s2155_s6, 4294966784  ;;  %s19_s17 = sadd.s32 1, %s2601_s17   ;;  %s3186_s12 = smov %s2585_s13 }
 0x160   : > { %p16_p5 = scmp.ge.s32.totalorder %s19_s17, 4   ;;  %s3187_s13 = smov %s2589_s14 }
 0x161   : > { %s3188_s14 = smov %s2689_s26  ;;  %s3189_s15 = smov %s2597_s16 }
 0x162   : > { %s3190_s16 = smov %s3192_s20  ;;  %18 = sbr.rel (!%p16_p5) target bundleno = 6 (0x6), region = 81 }
 0x169   :  { %2160 = vsyncpa [#allocation3], 1 }
 0x16a   :  { %2162 = vsyncpa [#allocation3 + $0x1], 1 }
 0x16b   :  { %2163 = vsyncpa [#allocation4], 1 }
 0x16c   :  { %2165 = vsyncpa [#allocation4 + $0x1], 1 }

</bundles_post_ra>
